<compile_context>
chip_gen: v5e
topology: v5e:2x2
jax: 0.10.0
libtpu: 0.0.40
codegen_flags: <defaults>
</compile_context>

<pallas_src>
import jax
import jax.numpy as jnp
from jax.experimental import pallas as pl
from jax.experimental.pallas import tpu as pltpu


def _round_up(x, m):
    return ((x + m - 1) // m) * m


def clip_zero_shot_kernel(x_ref, w_ref, txt_t_ref, logits_ref, acc_ref):
    """Streamed image projection -> L2 normalize -> cosine-similarity logits.

    x_ref:      (TM, TK)       bf16 flattened-image tile
    w_ref:      (TK, D_pad)    bf16 stand-in image-encoder projection weight tile
    txt_t_ref:  (D_pad, C_pad) bf16 pre-normalized text features, transposed (resident)
    logits_ref: (TM, C_pad)    f32 output logits tile (written on last K step)
    acc_ref:    (TM, D_pad)    f32 projection accumulator scratch
    """
    k = pl.program_id(1)

    @pl.when(k == 0)
    def _init():
        acc_ref[...] = jnp.zeros_like(acc_ref)

    # "encode_image" stand-in: (B, F) @ (F, D) projection, bf16 MXU, f32 acc.
    # TODO(synk): full ViT-B/32 encode_image (patch conv + transformer) is not
    # reproducible without the checkpoint; a deterministic linear projection
    # stands in for it.
    acc_ref[...] += jnp.dot(x_ref[...], w_ref[...],
                            preferred_element_type=jnp.float32)

    @pl.when(k == pl.num_programs(1) - 1)
    def _epilogue():
        img = acc_ref[...]
        # image_features /= image_features.norm(dim=-1, keepdim=True)
        # eps guards zero (padded) rows: rsqrt(0) -> inf -> NaN otherwise.
        sumsq = jnp.sum(img * img, axis=-1, keepdims=True)
        img_n = img * jax.lax.rsqrt(jnp.maximum(sumsq, 1e-12))
        # logits = image_features @ text_features.T
        # txt^T was normalized + transposed once in the wrapper (bf16);
        # bf16 x bf16 with f32 accumulation = single MXU pass everywhere.
        logits_ref[...] = jnp.dot(
            img_n.astype(jnp.bfloat16), txt_t_ref[...],
            preferred_element_type=jnp.float32,
        ).astype(logits_ref.dtype)


def _vmem_capacity_bytes():
    """Physical VMEM of the attached TPU generation (conservative fallback)."""
    try:
        return int(pltpu.get_tpu_info().vmem_capacity_bytes)
    except Exception:
        return 64 * 1024 * 1024  # v7x has the smallest VMEM; safe everywhere.


def clip_zero_shot_forward(x_nchw, w_img, text_feats, *, tm=None, tk=None,
                           num_tensorcores=1):
    """Pad/align, normalize text once, run the tiled Pallas kernel.

    num_tensorcores: set to 2 on v7x so the "parallel" batch axis produces at
    least two tiles (one per TensorCore) when the whole batch would otherwise
    fit in a single tile.
    """
    B = x_nchw.shape[0]
    F = x_nchw.shape[1] * x_nchw.shape[2] * x_nchw.shape[3]
    Fw, D = w_img.shape
    C = text_feats.shape[0]
    assert Fw == F and text_feats.shape[1] == D

    # Lane/sublane aligned padded sizes (lane dim multiple of 128).
    D_pad = _round_up(D, 128)
    C_pad = _round_up(C, 128)

    # Reduction tile over F: prefer the largest {1024,512,256,128} divisor of F
    # (no F padding copy); 1024 keeps the weight DMAs long and halves the
    # per-step grid overhead vs 512.
    if tk is None:
        tk = None
        for cand in (1024, 512, 256, 128):
            if F % cand == 0:
                tk = cand
                break
        if tk is None:
            tk = min(1024, _round_up(F, 128))
    F_pad = _round_up(F, tk)

    # ---- batch-tile selection from a per-generation VMEM budget -------------
    vmem_cap = _vmem_capacity_bytes()
    vmem_budget = int(vmem_cap * 0.75)                     # internal-scratch headroom
    per_row = 2 * tk * 2 + D_pad * 4 + 2 * C_pad * 4       # x dbl-buf + acc + out dbl-buf
    fixed = 2 * tk * D_pad * 2 + 2 * D_pad * C_pad * 2     # w dbl-buf + txt^T buffers
    B_min = _round_up(B, 16)                               # bf16 sublane packing
    if tm is None:
        tm_cap = max(16, ((vmem_budget - fixed) // per_row // 16) * 16)
        if B_min <= tm_cap:
            # Whole batch in one tile: the (F, D) weight streams exactly once.
            tm = B_min
            # On v7x keep >= num_tensorcores batch tiles so both cores work,
            # as long as each tile stays >=256 rows (compute-bound threshold).
            if num_tensorcores > 1 and B_min >= 256 * num_tensorcores:
                tm = _round_up(-(-B_min // num_tensorcores), 16)
        else:
            tm = (tm_cap // 256) * 256 if tm_cap >= 256 else tm_cap
    B_pad = _round_up(B, tm)

    # ---- inputs: cast, and only pad when actually needed ---------------------
    x_flat = x_nchw.reshape(B, F).astype(jnp.bfloat16)
    if (B_pad, F_pad) != (B, F):
        x_p = jnp.pad(x_flat, ((0, B_pad - B), (0, F_pad - F)))
    else:
        x_p = x_flat

    # NOTE: w_img is a constant; pre-cast / pre-pad it once outside the hot
    # path (this is constant-folded under jit).
    w_bf16 = w_img.astype(jnp.bfloat16)
    if (F_pad, D_pad) != (F, D):
        w_p = jnp.pad(w_bf16, ((0, F_pad - F), (0, D_pad - D)))
    else:
        w_p = w_bf16

    # "encode_text" stand-in: fixed matrix. Normalize + transpose ONCE here
    # (hoisted out of the per-grid-step kernel body), then cast to bf16.
    # TODO(synk): clip.tokenize + encode_text has no Pallas equivalent; text
    # features are a deterministic synthetic matrix.
    txt = text_feats.astype(jnp.float32)
    txt = txt * jax.lax.rsqrt(jnp.sum(txt * txt, axis=-1, keepdims=True))
    txt_t_small = txt.T.astype(jnp.bfloat16)
    if (D_pad, C_pad) != (D, C):
        txt_t = jnp.pad(txt_t_small, ((0, D_pad - D), (0, C_pad - C)))
    else:
        txt_t = txt_t_small

    grid = (B_pad // tm, F_pad // tk)

    # Explicit VMEM budget derived from the actual tile footprint, capped
    # below the queried physical VMEM of this generation.
    used = fixed + tm * per_row
    vmem_limit = int(min(max(used * 1.25, 32 * 1024 * 1024),
                         int(vmem_cap * 0.85)))

    logits_pad = pl.pallas_call(
        clip_zero_shot_kernel,
        out_shape=jax.ShapeDtypeStruct((B_pad, C_pad), jnp.float32),
        grid_spec=pltpu.PrefetchScalarGridSpec(
            num_scalar_prefetch=0,
            grid=grid,
            in_specs=[
                pl.BlockSpec((tm, tk), lambda i, k: (i, k)),          # x
                pl.BlockSpec((tk, D_pad), lambda i, k: (k, 0)),       # w_img
                pl.BlockSpec((D_pad, C_pad), lambda i, k: (0, 0)),    # txt^T
            ],
            out_specs=pl.BlockSpec((tm, C_pad), lambda i, k: (i, 0)),
            scratch_shapes=[pltpu.VMEM((tm, D_pad), jnp.float32)],
        ),
        compiler_params=pltpu.CompilerParams(
            dimension_semantics=("parallel", "arbitrary"),
            vmem_limit_bytes=vmem_limit,
        ),
    )(x_p, w_p, txt_t)

    # Slice off batch/class padding (padded rows/cols are discarded).
    return logits_pad[:B, :C]


def reference_forward(x_nchw, w_img, text_feats):
    """Pure-JAX reference (models the same bf16 rounding of the projection inputs)."""
    B = x_nchw.shape[0]
    x32 = x_nchw.reshape(B, -1).astype(jnp.bfloat16).astype(jnp.float32)
    w32 = w_img.astype(jnp.bfloat16).astype(jnp.float32)
    img = jnp.dot(x32, w32, precision=jax.lax.Precision.HIGHEST)
    img = img / jnp.linalg.norm(img, axis=-1, keepdims=True)
    txt = text_feats.astype(jnp.float32)
    txt = txt / jnp.linalg.norm(txt, axis=-1, keepdims=True)
    return jnp.dot(img, txt.T, precision=jax.lax.Precision.HIGHEST)


if __name__ == "__main__":
    # Small shapes consistent with the forward pass semantics.
    B, Cin, H, W = 2, 4, 16, 16      # image batch, NCHW  (F = 1024)
    D = 32                           # embedding dim (CLIP uses 512; scaled down)
    NUM_CLASSES = 8                  # number of zero-shot classes

    key = jax.random.PRNGKey(0)
    k_x, k_w, k_t = jax.random.split(key, 3)

    x = jax.random.normal(k_x, (B, Cin, H, W), dtype=jnp.float32)
    w_img = (jax.random.normal(k_w, (Cin * H * W, D), dtype=jnp.float32)
             * (1.0 / jnp.sqrt(Cin * H * W)))
    text_feats = jax.random.normal(k_t, (NUM_CLASSES, D), dtype=jnp.float32)

    logits = clip_zero_shot_forward(x, w_img, text_feats)
    jax.block_until_ready(logits)

    ref = reference_forward(x, w_img, text_feats)
    assert logits.shape == (B, NUM_CLASSES)
    # bf16 epilogue matmul -> slightly looser tolerance than the f32 version.
    assert jnp.allclose(logits, ref, atol=2e-2, rtol=2e-2), "mismatch vs reference"

    print("KERNEL_OK")
</pallas_src>

<mosaic_0001>
module attributes {stable_mosaic.version = 11 : i64} {
  func.func @clip_zero_shot_kernel(%arg0: i32, %arg1: i32, %arg2: memref<16x1024xbf16, #tpu.memory_space<vmem>>, %arg3: memref<1024x128xbf16, #tpu.memory_space<vmem>>, %arg4: memref<128x128xbf16, #tpu.memory_space<vmem>>, %arg5: memref<16x128xf32, #tpu.memory_space<vmem>>, %arg6: memref<16x128xf32, #tpu.memory_space<vmem>>) attributes {dimension_semantics = [#tpu.dimension_semantics<parallel>, #tpu.dimension_semantics<arbitrary>], iteration_bounds = array<i64: 1, 1>, scalar_prefetch = 0 : i64, scratch_operands = 1 : i64, tpu.core_type = #tpu.core_type<tc>, window_params = [{transform_indices = @transform_0, window_bounds = array<i64: 16, 1024>}, {transform_indices = @transform_1, window_bounds = array<i64: 1024, 128>}, {pipeline_mode = #tpu.pipeline_mode<synchronous>, transform_indices = @transform_2, window_bounds = array<i64: 128, 128>}, {transform_indices = @transform_3, window_bounds = array<i64: 16, 128>}]} {
    %c0_i32 = arith.constant 0 : i32
    %0 = arith.cmpi eq, %arg1, %c0_i32 : i32
    %1 = arith.extui %0 : i1 to i32
    %c0_i32_0 = arith.constant 0 : i32
    %2 = arith.cmpi ne, %1, %c0_i32_0 : i32
    scf.if %2 {
      %cst_10 = arith.constant 0.000000e+00 : f32
      %12 = vector.broadcast %cst_10 : f32 to vector<16x128xf32>
      %c0_11 = arith.constant 0 : index
      %c0_12 = arith.constant 0 : index
      %13 = vector.load %arg6[%c0_11, %c0_12] : memref<16x128xf32, #tpu.memory_space<vmem>>, vector<16x128xf32>
      tpu.vector_store %arg6[%c0_11, %c0_12], %12 {strides = array<i32>} : memref<16x128xf32, #tpu.memory_space<vmem>>, vector<16x128xf32>,
    } else {
    }
    %c0 = arith.constant 0 : index
    %c0_1 = arith.constant 0 : index
    %3 = vector.load %arg6[%c0, %c0_1] : memref<16x128xf32, #tpu.memory_space<vmem>>, vector<16x128xf32>
    %c0_2 = arith.constant 0 : index
    %c0_3 = arith.constant 0 : index
    %4 = vector.load %arg2[%c0_2, %c0_3] : memref<16x1024xbf16, #tpu.memory_space<vmem>>, vector<16x1024xbf16>
    %c0_4 = arith.constant 0 : index
    %c0_5 = arith.constant 0 : index
    %5 = vector.load %arg3[%c0_4, %c0_5] : memref<1024x128xbf16, #tpu.memory_space<vmem>>, vector<1024x128xbf16>
    %cst = arith.constant dense<0.000000e+00> : vector<16x128xf32>
    %6 = tpu.matmul %4, %5, %cst {dimension_numbers = #tpu.dot_dimension_numbers<[1], [0], [0], [1], [0, 0, 1, 1], [], []>} : vector<16x1024xbf16>, vector<1024x128xbf16>, vector<16x128xf32> -> vector<16x128xf32>
    %7 = arith.addf %3, %6 : vector<16x128xf32>
    %c0_6 = arith.constant 0 : index
    %c0_7 = arith.constant 0 : index
    %8 = vector.load %arg6[%c0_6, %c0_7] : memref<16x128xf32, #tpu.memory_space<vmem>>, vector<16x128xf32>
    tpu.vector_store %arg6[%c0_6, %c0_7], %7 {strides = array<i32>} : memref<16x128xf32, #tpu.memory_space<vmem>>, vector<16x128xf32>,
    %c0_i32_8 = arith.constant 0 : i32
    %9 = arith.cmpi eq, %arg1, %c0_i32_8 : i32
    %10 = arith.extui %9 : i1 to i32
    %c0_i32_9 = arith.constant 0 : i32
    %11 = arith.cmpi ne, %10, %c0_i32_9 : i32
    scf.if %11 {
      %c0_10 = arith.constant 0 : index
      %c0_11 = arith.constant 0 : index
      %12 = vector.load %arg6[%c0_10, %c0_11] : memref<16x128xf32, #tpu.memory_space<vmem>>, vector<16x128xf32>
      %13 = arith.mulf %12, %12 : vector<16x128xf32>
      %cst_12 = arith.constant dense<0.000000e+00> : vector<16xf32>
      %14 = vector.multi_reduction <add>, %13, %cst_12 [1] : vector<16x128xf32> to vector<16xf32>
      %15 = vector.shape_cast %14 : vector<16xf32> to vector<16x1xf32>
      %cst_13 = arith.constant 9.99999996E-13 : f32
      %16 = vector.broadcast %cst_13 : f32 to vector<16x1xf32>
      %17 = arith.maximumf %15, %16 : vector<16x1xf32>
      %18 = math.rsqrt %17 : vector<16x1xf32>
      %19 = vector.broadcast %18 : vector<16x1xf32> to vector<16x128xf32>
      %20 = arith.mulf %12, %19 : vector<16x128xf32>
      %21 = arith.truncf %20 : vector<16x128xf32> to vector<16x128xbf16>
      %c0_14 = arith.constant 0 : index
      %c0_15 = arith.constant 0 : index
      %22 = vector.load %arg4[%c0_14, %c0_15] : memref<128x128xbf16, #tpu.memory_space<vmem>>, vector<128x128xbf16>
      %cst_16 = arith.constant dense<0.000000e+00> : vector<16x128xf32>
      %23 = tpu.matmul %21, %22, %cst_16 {dimension_numbers = #tpu.dot_dimension_numbers<[1], [0], [0], [1], [0, 0, 1, 1], [], []>} : vector<16x128xbf16>, vector<128x128xbf16>, vector<16x128xf32> -> vector<16x128xf32>
      %c0_17 = arith.constant 0 : index
      %c0_18 = arith.constant 0 : index
      %24 = vector.load %arg5[%c0_17, %c0_18] : memref<16x128xf32, #tpu.memory_space<vmem>>, vector<16x128xf32>
      tpu.vector_store %arg5[%c0_17, %c0_18], %23 {strides = array<i32>} : memref<16x128xf32, #tpu.memory_space<vmem>>, vector<16x128xf32>,
    } else {
    }
    return
  }
  func.func @transform_0(%arg0: i32, %arg1: i32) -> (i32, i32) {
    %c0_i32 = arith.constant 0 : i32
    return %arg0, %arg1 : i32, i32
  }
  func.func @transform_1(%arg0: i32, %arg1: i32) -> (i32, i32) {
    %c0_i32 = arith.constant 0 : i32
    %c0_i32_0 = arith.constant 0 : i32
    return %arg1, %c0_i32 : i32, i32
  }
  func.func @transform_2(%arg0: i32, %arg1: i32) -> (i32, i32) {
    %c0_i32 = arith.constant 0 : i32
    %c0_i32_0 = arith.constant 0 : i32
    %c0_i32_1 = arith.constant 0 : i32
    return %c0_i32, %c0_i32_0 : i32, i32
  }
  func.func @transform_3(%arg0: i32, %arg1: i32) -> (i32, i32) {
    %c0_i32 = arith.constant 0 : i32
    %c0_i32_0 = arith.constant 0 : i32
    return %arg0, %c0_i32 : i32, i32
  }
}

</mosaic_0001>

<bundles_post_ra>
// kernel: tpu_custom_call.1
= control target key start
LH: loop header
LB: loop body
LE: loop exit
PB: predicated region body
PF: predicated region fallthrough
CT: control target
= control target key end

     0   :  { %8 = vsyncpa [#allocation4], 0  ;;  %s1440_s0 = inlined_call_operand.hbm [shape: bf16[16,1024], index: 0, kind: input, shape index: {}]   ;;  %s1441_s1 = inlined_call_operand.hbm [shape: bf16[1024,128], index: 1, kind: input, shape index: {}]   ;;  %s1442_s2 = inlined_call_operand.hbm [shape: bf16[128,128], index: 2, kind: input, shape index: {}]   ;;  %s1443_s3 = inlined_call_operand.hbm [shape: f32[16,128], index: 3, kind: output, shape index: {}]  }
   0x1   :  { %9 = vsyncpa [#allocation7], 0  ;;  %s28_s14 = sshll.u32 %s1441_s1, 4  ;;  %s29_s14 = int_to_ptr.hbm [resolvable:$true] %s28_s14 }
   0x2   :  { %10 = vsyncpa [#allocation5], 0  ;;  %s1398_s15 = smov [#allocation6]   ;;  %s15_s19 = sshll.u32 %s1440_s0, 4  ;;  %s16_s19 = int_to_ptr.hbm [resolvable:$true] %s15_s19 }
   0x3   :  { %s30_s16 = sshll.u32 %s1398_s15, 4  ;;  %s1399_s20 = smov 64   ;;  %s31_s16 = int_to_ptr.vmem [resolvable:$true] %s30_s16 }
   0x4   :  { %s1400_s21 = smov 4   ;;  %s1401_s22 = smov [#allocation3]  }
   0x5   :  { %36 = dma.hbm_to_vmem [thread:$0]  %s29_s14, 8192, %s31_s16, [#allocation7], %s1399_s20, %s1399_s20, %s1400_s21  }
   0x6   :  { %s17_s23 = sshll.u32 %s1401_s22, 4  ;;  %s1402_s24 = smov 512   ;;  %s18_s23 = int_to_ptr.vmem [resolvable:$true] %s17_s23 }
   0x7   :  { %s1403_s25 = smov 32   ;;  %s41_s27 = sshll.u32 %s1442_s2, 4  ;;  %s42_s27 = int_to_ptr.hbm [resolvable:$true] %s41_s27 }
   0x8   :  { %23 = dma.hbm_to_vmem [thread:$0]  %s16_s19, 1024, %s18_s23, [#allocation4], %s1402_s24, %s1402_s24, %s1403_s25  }
   0x9   :  { %s1404_s28 = smov [#allocation8]  }
   0xa   :  { %s43_s29 = sshll.u32 %s1404_s28, 4  ;;  %s44_s29 = int_to_ptr.vmem [resolvable:$true] %s43_s29 }
   0xb   :  { %49 = dma.hbm_to_vmem [thread:$0]  %s42_s27, 1024, %s44_s29, [#allocation7], %s1399_s20, %s1399_s20, %s1400_s21  }
   0xc   :  { %1392 = dma.done.wait [#allocation4], 1024  }
   0xd   :  { %1393 = vsyncadd [#allocation4], 4294966272 }
   0xe   :  { %1394 = dma.done.wait [#allocation7], 9216  }
   0xf   :  { %1395 = vsyncadd [#allocation7], 4294958080  ;;  %v1217_v0 = vld [vmem:[#allocation6 + $0x38] sm:$0xff]  ;;  %v1216_v4 = vld [vmem:[#allocation6 + $0x30] sm:$0xff]  ;;  %s1405_s0 = smov [#allocation9]   ;;  %s868_s5 = sshll.u32 %s1443_s3, 4  ;;  %s869_s5 = int_to_ptr.hbm [resolvable:$true] %s868_s5 }
  0x10   :  { %v1225_v1 = vld [vmem:[#allocation6 + $0x78] sm:$0xff]  ;;  %630 = vmatpush.bf16.msra.mxu0 %v1217_v0  ;;  %v1224_v5 = vld [vmem:[#allocation6 + $0x70] sm:$0xff]  ;;  %v1215_v8 = vld [vmem:[#allocation6 + $0x28] sm:$0xff]  ;;  %s866_s2 = sshll.u32 %s1405_s0, 4  ;;  %s1406_s6 = smov 128   ;;  %s867_s2 = int_to_ptr.vmem [resolvable:$true] %s866_s2 }
  0x11   :  { %v1233_v2 = vld [vmem:[#allocation6 + $0xb8] sm:$0xff]  ;;  %644 = vmatpush.bf16.msra.mxu1 %v1225_v1  ;;  %v1232_v6 = vld [vmem:[#allocation6 + $0xb0] sm:$0xff]  ;;  %v1223_v9 = vld [vmem:[#allocation6 + $0x68] sm:$0xff]  ;;  %s1407_s7 = smov 8  }
  0x12   :  { %v1241_v3 = vld [vmem:[#allocation6 + $0xf8] sm:$0xff]  ;;  %658 = vmatpush.bf16.msra.mxu2 %v1233_v2  ;;  %v1240_v7 = vld [vmem:[#allocation6 + $0xf0] sm:$0xff]  ;;  %v1231_v10 = vld [vmem:[#allocation6 + $0xa8] sm:$0xff] }
  0x13   :  { %672 = vmatpush.bf16.msra.mxu3 %v1241_v3  ;;  %v1239_v11 = vld [vmem:[#allocation6 + $0xe8] sm:$0xff]  ;;  %v1214_v12 = vld [vmem:[#allocation6 + $0x20] sm:$0xff]  ;;  %v1213_v16 = vld [vmem:[#allocation6 + $0x18] sm:$0xff] }
  0x14   :  { %631 = vmatpush.bf16.msra.mxu0 %v1216_v4  ;;  %v1222_v13 = vld [vmem:[#allocation6 + $0x60] sm:$0xff]  ;;  %v1221_v17 = vld [vmem:[#allocation6 + $0x58] sm:$0xff]  ;;  %v1212_v20 = vld [vmem:[#allocation6 + $0x10] sm:$0xff] }
  0x15   :  { %645 = vmatpush.bf16.msra.mxu1 %v1224_v5  ;;  %v1230_v14 = vld [vmem:[#allocation6 + $0xa0] sm:$0xff]  ;;  %v1229_v18 = vld [vmem:[#allocation6 + $0x98] sm:$0xff]  ;;  %v1220_v21 = vld [vmem:[#allocation6 + $0x50] sm:$0xff] }
  0x16   :  { %659 = vmatpush.bf16.msra.mxu2 %v1232_v6  ;;  %v1238_v15 = vld [vmem:[#allocation6 + $0xe0] sm:$0xff]  ;;  %v1237_v19 = vld [vmem:[#allocation6 + $0xd8] sm:$0xff]  ;;  %v1228_v22 = vld [vmem:[#allocation6 + $0x90] sm:$0xff] }
  0x17   :  { %673 = vmatpush.bf16.msra.mxu3 %v1240_v7  ;;  %v1236_v23 = vld [vmem:[#allocation6 + $0xd0] sm:$0xff]  ;;  %v1211_v24 = vld [vmem:[#allocation6 + $0x8] sm:$0xff]  ;;  %v1210_v28 = vld [vmem:[#allocation6] sm:$0xff] }
  0x18   :  { %632 = vmatpush.bf16.msra.mxu0 %v1215_v8  ;;  %v1219_v25 = vld [vmem:[#allocation6 + $0x48] sm:$0xff]  ;;  %v1218_v29 = vld [vmem:[#allocation6 + $0x40] sm:$0xff]  ;;  %v1249_v32 = vld [vmem:[#allocation6 + $0x138] sm:$0xff] }
  0x19   :  { %646 = vmatpush.bf16.msra.mxu1 %v1223_v9  ;;  %v1227_v26 = vld [vmem:[#allocation6 + $0x88] sm:$0xff]  ;;  %v1226_v30 = vld [vmem:[#allocation6 + $0x80] sm:$0xff]  ;;  %v1257_v33 = vld [vmem:[#allocation6 + $0x178] sm:$0xff] }
  0x1a   :  { %660 = vmatpush.bf16.msra.mxu2 %v1231_v10  ;;  %v1235_v27 = vld [vmem:[#allocation6 + $0xc8] sm:$0xff]  ;;  %v1234_v31 = vld [vmem:[#allocation6 + $0xc0] sm:$0xff]  ;;  %v1265_v42 = vld [vmem:[#allocation6 + $0x1b8] sm:$0xff] }
  0x1b   :  { %674 = vmatpush.bf16.msra.mxu3 %v1239_v11  ;;  %v892_v34 = vld [vmem:[#allocation3 + $0x8] sm:$0xf]  ;;  %v1203_v36 = vld [vmem:[#allocation3 + $0xc] sm:$0xf]  ;;  %v884_v38 = vld [vmem:[#allocation3] sm:$0xf] }
  0x1c   :  { %633 = vmatpush.bf16.msra.mxu0 %v1214_v12  ;;  %v1207_v35 = vld [vmem:[#allocation3 + $0x24] sm:$0xf0]  ;;  %v894_v37 = vld [vmem:[#allocation3 + $0x28] sm:$0xf0]  ;;  %v1206_v39 = vld [vmem:[#allocation3 + $0x1c] sm:$0xf0] }
  0x1d   :  { %647 = vmatpush.bf16.msra.mxu1 %v1222_v13  ;;  %v1202_v40 = vld [vmem:[#allocation3 + $0x4] sm:$0xf]  ;;  %v1273_v43 = vld [vmem:[#allocation6 + $0x1f8] sm:$0xff]  ;;  %v893_v44 = vor.u32 %v1207_v35, %v892_v34  ;;  %v897_v45 = vor.u32 %v1203_v36, %v894_v37  ;;  %v885_v46 = vor.u32 %v1206_v39, %v884_v38  ;;  %v1248_v48 = vld [vmem:[#allocation6 + $0x130] sm:$0xff] }
  0x1e   :  { %661 = vmatpush.bf16.msra.mxu2 %v1230_v14  ;;  %v886_v41 = vld [vmem:[#allocation3 + $0x20] sm:$0xf0]  ;;  %v1256_v49 = vld [vmem:[#allocation6 + $0x170] sm:$0xff]  ;;  %v1247_v52 = vld [vmem:[#allocation6 + $0x128] sm:$0xff] }
  0x1f   :  { %675 = vmatpush.bf16.msra.mxu3 %v1238_v15  ;;  %v889_v47 = vor.u32 %v1202_v40, %v886_v41  ;;  %v1264_v50 = vld [vmem:[#allocation6 + $0x1b0] sm:$0xff]  ;;  %v1255_v53 = vld [vmem:[#allocation6 + $0x168] sm:$0xff]  ;;  %v1246_v56 = vld [vmem:[#allocation6 + $0x120] sm:$0xff] }
  0x20   :  { %634 = vmatpush.bf16.msra.mxu0 %v1213_v16  ;;  %v1272_v51 = vld [vmem:[#allocation6 + $0x1f0] sm:$0xff]  ;;  %v1263_v54 = vld [vmem:[#allocation6 + $0x1a8] sm:$0xff]  ;;  %v1254_v57 = vld [vmem:[#allocation6 + $0x160] sm:$0xff] }
  0x21   :  { %648 = vmatpush.bf16.msra.mxu1 %v1221_v17  ;;  %v1271_v55 = vld [vmem:[#allocation6 + $0x1e8] sm:$0xff]  ;;  %v1262_v58 = vld [vmem:[#allocation6 + $0x1a0] sm:$0xff]  ;;  %v1245_v60 = vld [vmem:[#allocation6 + $0x118] sm:$0xff] }
  0x22   :  { %662 = vmatpush.bf16.msra.mxu2 %v1229_v18  ;;  %v1270_v59 = vld [vmem:[#allocation6 + $0x1e0] sm:$0xff]  ;;  %v1253_v61 = vld [vmem:[#allocation6 + $0x158] sm:$0xff]  ;;  %v1244_v0 = vld [vmem:[#allocation6 + $0x110] sm:$0xff] }
  0x23   :  { %676 = vmatpush.bf16.msra.mxu3 %v1237_v19  ;;  %v1261_v62 = vld [vmem:[#allocation6 + $0x198] sm:$0xff]  ;;  %v1252_v1 = vld [vmem:[#allocation6 + $0x150] sm:$0xff]  ;;  %v1243_v4 = vld [vmem:[#allocation6 + $0x108] sm:$0xff] }
  0x24   :  { %635 = vmatpush.bf16.msra.mxu0 %v1212_v20  ;;  %v1269_v63 = vld [vmem:[#allocation6 + $0x1d8] sm:$0xff]  ;;  %v1260_v2 = vld [vmem:[#allocation6 + $0x190] sm:$0xff]  ;;  %v1251_v5 = vld [vmem:[#allocation6 + $0x148] sm:$0xff] }
  0x25   :  { %649 = vmatpush.bf16.msra.mxu1 %v1220_v21  ;;  %v1268_v3 = vld [vmem:[#allocation6 + $0x1d0] sm:$0xff]  ;;  %v1259_v6 = vld [vmem:[#allocation6 + $0x188] sm:$0xff]  ;;  %v1242_v8 = vld [vmem:[#allocation6 + $0x100] sm:$0xff] }
  0x26   :  { %663 = vmatpush.bf16.msra.mxu2 %v1228_v22  ;;  %v1267_v7 = vld [vmem:[#allocation6 + $0x1c8] sm:$0xff]  ;;  %v1250_v9 = vld [vmem:[#allocation6 + $0x140] sm:$0xff]  ;;  %v900_v12 = vld [vmem:[#allocation3 + $0x10] sm:$0xf] }
  0x27   :  { %677 = vmatpush.bf16.msra.mxu3 %v1236_v23  ;;  %v1258_v10 = vld [vmem:[#allocation6 + $0x180] sm:$0xff]  ;;  %v1208_v13 = vld [vmem:[#allocation3 + $0x2c] sm:$0xf0]  ;;  %v1204_v14 = vld [vmem:[#allocation3 + $0x14] sm:$0xf] }
  0x28   :  { %636 = vmatpush.bf16.msra.mxu0 %v1211_v24  ;;  %v1266_v11 = vld [vmem:[#allocation6 + $0x1c0] sm:$0xff]  ;;  %v902_v15 = vld [vmem:[#allocation3 + $0x30] sm:$0xf0]  ;;  %v908_v16 = vld [vmem:[#allocation3 + $0x18] sm:$0xf]  ;;  %v901_v20 = vor.u32 %v1208_v13, %v900_v12 }
  0x29   :  { %650 = vmatpush.bf16.msra.mxu1 %v1219_v25  ;;  %v1209_v17 = vld [vmem:[#allocation3 + $0x34] sm:$0xf0]  ;;  %v1205_v18 = vld [vmem:[#allocation3 + $0x1c] sm:$0xf]  ;;  %v905_v21 = vor.u32 %v1204_v14, %v902_v15 }
  0x2a   :  { %664 = vmatpush.bf16.msra.mxu2 %v1227_v26  ;;  %v910_v19 = vld [vmem:[#allocation3 + $0x38] sm:$0xf0]  ;;  %v909_v22 = vor.u32 %v1209_v17, %v908_v16 }
  0x2b   :  { %678 = vmatpush.bf16.msra.mxu3 %v1235_v27  ;;  %v913_v23 = vor.u32 %v1205_v18, %v910_v19 }
  0x2c   :  { %637 = vmatpush.bf16.msra.mxu0 %v1210_v28 }
  0x2d   :  { %651 = vmatpush.bf16.msra.mxu1 %v1218_v29 }
  0x2e   :  { %665 = vmatpush.bf16.msra.mxu2 %v1226_v30 }
  0x2f   :  { %679 = vmatpush.bf16.msra.mxu3 %v1234_v31  ;;  %638 = vmatmul.bf16.vlgmr.msra.gmra.mxu0 %v885_v46 }
  0x30   :  { %686 = vmatpush.bf16.msrb.mxu0 %v1249_v32  ;;  %652 = vmatmul.bf16.vlgmr.msra.gmra.mxu1 %v889_v47 }
  0x31   :  { %700 = vmatpush.bf16.msrb.mxu1 %v1257_v33  ;;  %666 = vmatmul.bf16.vlgmr.msra.gmra.mxu2 %v893_v44 }
  0x32   :  { %714 = vmatpush.bf16.msrb.mxu2 %v1265_v42  ;;  %680 = vmatmul.bf16.vlgmr.msra.gmra.mxu3 %v897_v45 }
  0x33   :  { %728 = vmatpush.bf16.msrb.mxu3 %v1273_v43 }
  0x34   :  { %687 = vmatpush.bf16.msrb.mxu0 %v1248_v48 }
  0x35   :  { %701 = vmatpush.bf16.msrb.mxu1 %v1256_v49 }
  0x36   :  { %715 = vmatpush.bf16.msrb.mxu2 %v1264_v50 }
  0x37   :  { %729 = vmatpush.bf16.msrb.mxu3 %v1272_v51 }
  0x38   :  { %688 = vmatpush.bf16.msrb.mxu0 %v1247_v52 }
  0x39   :  { %702 = vmatpush.bf16.msrb.mxu1 %v1255_v53 }
  0x3a   :  { %716 = vmatpush.bf16.msrb.mxu2 %v1263_v54 }
  0x3b   :  { %730 = vmatpush.bf16.msrb.mxu3 %v1271_v55 }
  0x3c   :  { %689 = vmatpush.bf16.msrb.mxu0 %v1246_v56  ;;  %v1281_v56 = vld [vmem:[#allocation8 + $0x38] sm:$0xff] }
  0x3d   :  { %703 = vmatpush.bf16.msrb.mxu1 %v1254_v57  ;;  %v1280_v57 = vld [vmem:[#allocation8 + $0x30] sm:$0xff] }
  0x3e   :  { %717 = vmatpush.bf16.msrb.mxu2 %v1262_v58  ;;  %v1279_v58 = vld [vmem:[#allocation8 + $0x28] sm:$0xff] }
  0x3f   :  { %731 = vmatpush.bf16.msrb.mxu3 %v1270_v59  ;;  %v1278_v59 = vld [vmem:[#allocation8 + $0x20] sm:$0xff] }
  0x40   :  { %690 = vmatpush.bf16.msrb.mxu0 %v1245_v60  ;;  %v1277_v60 = vld [vmem:[#allocation8 + $0x18] sm:$0xff] }
  0x41   :  { %704 = vmatpush.bf16.msrb.mxu1 %v1253_v61  ;;  %v1276_v61 = vld [vmem:[#allocation8 + $0x10] sm:$0xff] }
  0x42   :  { %718 = vmatpush.bf16.msrb.mxu2 %v1261_v62  ;;  %v1275_v62 = vld [vmem:[#allocation8 + $0x8] sm:$0xff] }
  0x43   :  { %732 = vmatpush.bf16.msrb.mxu3 %v1269_v63  ;;  %v1274_v63 = vld [vmem:[#allocation8] sm:$0xff] }
  0x44   :  { %691 = vmatpush.bf16.msrb.mxu0 %v1244_v0 }
  0x45   :  { %705 = vmatpush.bf16.msrb.mxu1 %v1252_v1 }
  0x46   :  { %719 = vmatpush.bf16.msrb.mxu2 %v1260_v2 }
  0x47   :  { %733 = vmatpush.bf16.msrb.mxu3 %v1268_v3 }
  0x48   :  { %692 = vmatpush.bf16.msrb.mxu0 %v1243_v4 }
  0x49   :  { %706 = vmatpush.bf16.msrb.mxu1 %v1251_v5 }
  0x4a   :  { %720 = vmatpush.bf16.msrb.mxu2 %v1259_v6 }
  0x4b   :  { %734 = vmatpush.bf16.msrb.mxu3 %v1267_v7 }
  0x4c   :  { %693 = vmatpush.bf16.msrb.mxu0 %v1242_v8 }
  0x4d   :  { %707 = vmatpush.bf16.msrb.mxu1 %v1250_v9 }
  0x4e   :  { %721 = vmatpush.bf16.msrb.mxu2 %v1258_v10 }
  0x4f   :  { %735 = vmatpush.bf16.msrb.mxu3 %v1266_v11  ;;  %694 = vmatmul.bf16.vlgmr.msrb.gmra.mxu0 %v901_v20 }
  0x50   :  { %708 = vmatmul.bf16.vlgmr.msrb.gmra.mxu1 %v905_v21  ;;  %846 = vmatpush.bf16.msra.mxu0 %v1281_v56 }
  0x51   :  { %722 = vmatmul.bf16.vlgmr.msrb.gmra.mxu2 %v909_v22 }
  0x52   :  { %736 = vmatmul.bf16.vlgmr.msrb.gmra.mxu3 %v913_v23 }
  0x54   :  { %847 = vmatpush.bf16.msra.mxu0 %v1280_v57 }
  0x58   :  { %848 = vmatpush.bf16.msra.mxu0 %v1279_v58 }
  0x5c   :  { %849 = vmatpush.bf16.msra.mxu0 %v1278_v59 }
  0x60   :  { %850 = vmatpush.bf16.msra.mxu0 %v1277_v60 }
  0x64   :  { %851 = vmatpush.bf16.msra.mxu0 %v1276_v61 }
  0x68   :  { %852 = vmatpush.bf16.msra.mxu0 %v1275_v62 }
  0x6c   :  { %853 = vmatpush.bf16.msra.mxu0 %v1274_v63 }
  0xac   :  { %v639_v24 = vpop.f32.mrf.mxu0 }
  0xad   :  { %v653_v25 = vpop.f32.mrf.mxu1 }
  0xae   :  { %v654_v28 = vadd.f32 %v653_v25, %v639_v24 }
  0xb4   :  { %v667_v26 = vpop.f32.mrf.mxu2  ;;  %v641_v29 = vpop.f32.mrf.mxu0 }
  0xb5   :  { %v681_v27 = vpop.f32.mrf.mxu3  ;;  %v655_v30 = vpop.f32.mrf.mxu1  ;;  %v668_v31 = vadd.f32 %v667_v26, %v654_v28 }
  0xb6   :  { %v656_v35 = vadd.f32 %v655_v30, %v641_v29 }
  0xb7   :  { %v682_v34 = vadd.f32 %v681_v27, %v668_v31 }
  0xbc   :  { %v669_v32 = vpop.f32.mrf.mxu2 }
  0xbd   :  { %v683_v33 = vpop.f32.mrf.mxu3  ;;  %v670_v39 = vadd.f32 %v669_v32, %v656_v35 }
  0xbf   :  { %v684_v43 = vadd.f32 %v683_v33, %v670_v39 }
  0xcc   :  { %v695_v36 = vpop.f32.mrf.mxu0 }
  0xcd   :  { %v696_v37 = vadd.f32 %v695_v36, %v682_v34  ;;  %v709_v38 = vpop.f32.mrf.mxu1 }
  0xcf   :  { %v710_v40 = vadd.f32 %v709_v38, %v696_v37 }
  0xd4   :  { %v723_v41 = vpop.f32.mrf.mxu2  ;;  %v697_v45 = vpop.f32.mrf.mxu0 }
  0xd5   :  { %v737_v42 = vpop.f32.mrf.mxu3  ;;  %v724_v44 = vadd.f32 %v723_v41, %v710_v40  ;;  %v698_v47 = vadd.f32 %v697_v45, %v684_v43  ;;  %v711_v49 = vpop.f32.mrf.mxu1 }
  0xd7   :  { %v738_v46 = vadd.f32 %v737_v42, %v724_v44  ;;  %v712_v50 = vadd.f32 %v711_v49, %v698_v47 }
  0xd9   :  { %v751_v48 = vmul.f32 %v738_v46, %v738_v46 }
  0xdb   :  { %753 = vadd.xlane.f32.xlu0 %v751_v48 }
  0xdc   :  { %v725_v51 = vpop.f32.mrf.mxu2 }
  0xdd   :  { %v726_v52 = vadd.f32 %v725_v51, %v712_v50  ;;  %v739_v53 = vpop.f32.mrf.mxu3 }
  0xdf   :  { %v740_v54 = vadd.f32 %v739_v53, %v726_v52 }
  0xe1   :  { %v752_v55 = vmul.f32 %v740_v54, %v740_v54 }
  0xe3   :  { %755 = vadd.xlane.f32.xlu0 %v752_v55 }
 0x14e   :  { %v754_v0 = vpop.xlane.xlu0 %753 }
 0x14f   :  { %v757_v1 = vmax.f32 %v754_v0, 1e-12 }
 0x151   :  { %1292 = vrsqrt.f32 %v757_v1  ;;  %vm765_vm1 = vweird.f32 %v757_v1 }
 0x156   :  { %v756_v2 = vpop.xlane.xlu0 %755 }
 0x157   :  { %v1293_v3 = vpop.eup %1292  ;;  %v758_v4 = vmax.f32 %v756_v2, 1e-12 }
 0x158   :  { %v760_v5 = vmul.f32 %v1293_v3, %v757_v1  ;;  %vm766_vm0 = vweird.f32 %v1293_v3 }
 0x159   :  { %1294 = vrsqrt.f32 %v758_v4  ;;  %vm767_vm3 = vmor %vm765_vm1, %vm766_vm0  ;;  %vm775_vm4 = vweird.f32 %v758_v4 }
 0x15a   :  { %v761_v6 = vmul.f32 %v1293_v3, %v760_v5 }
 0x15c   :  { %v762_v7 = vmul.f32 0.5, %v761_v6 }
 0x15e   :  { %v763_v9 = vsub.f32 1.5, %v762_v7 }
 0x15f   :  { %v1295_v8 = vpop.eup %1294 }
 0x160   :  { %v770_v10 = vmul.f32 %v1295_v8, %v758_v4  ;;  %v764_v12 = vmul.f32 %v1293_v3, %v763_v9  ;;  %vm776_vm2 = vweird.f32 %v1295_v8 }
 0x161   :  { %vm777_vm5 = vmor %vm775_vm4, %vm776_vm2 }
 0x162   :  { %v771_v11 = vmul.f32 %v1295_v8, %v770_v10  ;;  %v768_v15 = vsel %vm767_vm3, %v1293_v3, %v764_v12 }
 0x163   :  { %v779_v18 = vmul.f32 %v768_v15, %v738_v46 }
 0x164   :  { %v772_v13 = vmul.f32 0.5, %v771_v11 }
 0x166   :  { %v773_v14 = vsub.f32 1.5, %v772_v13 }
 0x168   :  { %v774_v16 = vmul.f32 %v1295_v8, %v773_v14 }
 0x16a   :  { %v778_v17 = vsel %vm777_vm5, %v1295_v8, %v774_v16 }
 0x16b   :  { %v780_v19 = vmul.f32 %v778_v17, %v740_v54 }
 0x16d   :  { %v781_v20 = vpack.c.bf16 %v780_v19, %v779_v18 }
 0x16f   :  { %854 = vmatmul.bf16.vlgmr.msra.gmra.mxu0 %v781_v20 }
 0x1ec   :  { %v855_v21 = vpop.f32.mrf.mxu0 }
 0x1ed   :  { %860 = vst [vmem:[#allocation9] sm:$0xff] %v855_v21 }
 0x1f4   :  { %v857_v22 = vpop.f32.mrf.mxu0 }
 0x1f5   :  { %861 = vst [vmem:[#allocation9 + $0x8] sm:$0xff] %v857_v22 }
 0x1f6   :  { %874 = dma.vmem_to_hbm [thread:$0]  %s867_s2, 256, %s869_s5, [#allocation5], %s1406_s6, %s1406_s6, %s1407_s7  }
 0x1f7   :  { %1396 = dma.done.wait [#allocation5], 256  }
 0x1f8   :  { %1397 = vsyncadd [#allocation5], 4294967040 }
 0x1f9   :  { %879 = vsyncpa [#allocation4], 1 }
 0x1fa   :  { %880 = vsyncpa [#allocation7], 1 }
 0x1fb   :  { %881 = vsyncpa [#allocation5], 1 }

</bundles_post_ra>
